<compile_context>
chip_gen: v5e
topology: v5e:2x2
jax: 0.10.0
libtpu: 0.0.40
codegen_flags: <defaults>
</compile_context>

<pallas_src>
import functools

import jax
import jax.numpy as jnp
from jax import lax
from jax.experimental import pallas as pl
from jax.experimental.pallas import tpu as pltpu


def double_conv(x, w1, bn1, w2, bn2, *, eps=1e-5):
    """Fused DoubleConv forward.

    x:   (N, C_in, H, W)      NCHW, like PyTorch
    w1:  (C_mid, C_in, 3, 3)  PyTorch Conv2d weight layout (no bias)
    w2:  (C_out, C_mid, 3, 3)
    bn1: (gamma, beta, running_mean, running_var) each (C_mid,)
    bn2: (gamma, beta, running_mean, running_var) each (C_out,)
    returns (N, C_out, H, W)
    """
    N, C_in, H, W = x.shape
    C_mid = w1.shape[0]
    C_out = w2.shape[0]
    Hp, Wp = H + 2, W + 2            # spatially zero-padded image
    L = Hp * Wp                      # flattened padded pixel axis (lane axis)
    Lext = L + 2 * (Wp + 1)          # extra zero margin so all 9 shifts are in-bounds

    # ---- wrapper glue: no transposes, only pads + free reshapes ----
    xp = jnp.pad(x, ((0, 0), (0, 0), (1, 1), (1, 1)))                    # (N,C_in,Hp,Wp)
    xext = jnp.pad(xp.reshape(N, C_in, L), ((0, 0), (0, 0), (Wp + 1, Wp + 1)))

    # weights packed per spatial tap: w_packed[dy*3+dx] = w[:, :, dy, dx]
    w1p = jnp.transpose(w1, (2, 3, 0, 1)).reshape(9, C_mid, C_in)
    w2p = jnp.transpose(w2, (2, 3, 0, 1)).reshape(9, C_out, C_mid)

    def fold_bn(gamma, beta, mean, var):
        s = gamma / jnp.sqrt(var + eps)
        return s.reshape(-1, 1), (beta - mean * s).reshape(-1, 1)

    s1, b1 = fold_bn(*bn1)
    s2, b2 = fold_bn(*bn2)

    # 1 at real pixels, 0 on the padding ring (zeroes conv2's halo & final borders)
    mask = (jnp.zeros((Hp, Wp), x.dtype).at[1:1 + H, 1:1 + W].set(1.0)).reshape(1, L)

    def kernel(x_ref, w1_ref, w2_ref, s1_ref, b1_ref, s2_ref, b2_ref,
               mask_ref, o_ref, hext_ref):
        xw = x_ref[0]                                       # (C_in, Lext), VMEM resident

        # ---- conv1: 9 shifted channel-major matmuls (pixels on the lane axis) ----
        acc1 = jnp.zeros((C_mid, L), jnp.float32)
        for dy in range(3):
            for dx in range(3):
                k = dy * 3 + dx
                start = dy * Wp + dx                        # static lane-axis slice
                xs = xw[:, start:start + L]                 # (C_in, L)
                acc1 = acc1 + jnp.dot(w1_ref[k], xs,
                                      preferred_element_type=jnp.float32)
        # BN (folded scale/shift) + ReLU, zero the padding ring for the next conv
        h = jnp.maximum(acc1 * s1_ref[...] + b1_ref[...], 0.0) * mask_ref[...]

        # ---- stage intermediate in padded-flat layout (VMEM scratch, never HBM) ----
        hext_ref[...] = jnp.zeros_like(hext_ref)
        hext_ref[:, Wp + 1:Wp + 1 + L] = h
        hw = hext_ref[...]                                  # (C_mid, Lext)

        # ---- conv2 ----
        acc2 = jnp.zeros((C_out, L), jnp.float32)
        for dy in range(3):
            for dx in range(3):
                k = dy * 3 + dx
                start = dy * Wp + dx
                hs = hw[:, start:start + L]                 # (C_mid, L)
                acc2 = acc2 + jnp.dot(w2_ref[k], hs,
                                      preferred_element_type=jnp.float32)
        y = jnp.maximum(acc2 * s2_ref[...] + b2_ref[...], 0.0) * mask_ref[...]
        o_ref[0] = y.astype(o_ref.dtype)

    flops = 2 * N * H * W * 9 * (C_in * C_mid + C_mid * C_out)
    bytes_accessed = 4 * (N * C_in * Lext + N * C_out * L
                          + 9 * (C_in * C_mid + C_mid * C_out)
                          + 2 * (C_mid + C_out) + L)

    out_flat = pl.pallas_call(
        kernel,
        out_shape=jax.ShapeDtypeStruct((N, C_out, L), x.dtype),
        grid_spec=pltpu.PrefetchScalarGridSpec(
            num_scalar_prefetch=0,
            grid=(N,),
            in_specs=[
                pl.BlockSpec((1, C_in, Lext), lambda n: (n, 0, 0)),     # activations
                pl.BlockSpec((9, C_mid, C_in), lambda n: (0, 0, 0)),    # w1 (resident)
                pl.BlockSpec((9, C_out, C_mid), lambda n: (0, 0, 0)),   # w2 (resident)
                pl.BlockSpec((C_mid, 1), lambda n: (0, 0)),             # bn1 scale
                pl.BlockSpec((C_mid, 1), lambda n: (0, 0)),             # bn1 shift
                pl.BlockSpec((C_out, 1), lambda n: (0, 0)),             # bn2 scale
                pl.BlockSpec((C_out, 1), lambda n: (0, 0)),             # bn2 shift
                pl.BlockSpec((1, L), lambda n: (0, 0)),                 # interior mask
            ],
            out_specs=pl.BlockSpec((1, C_out, L), lambda n: (n, 0, 0)),
            scratch_shapes=[pltpu.VMEM((C_mid, Lext), jnp.float32)],
        ),
        compiler_params=pltpu.CompilerParams(
            dimension_semantics=("parallel",),
        ),
        cost_estimate=pl.CostEstimate(
            flops=flops, transcendentals=0, bytes_accessed=bytes_accessed),
    )(xext, w1p, w2p, s1, b1, s2, b2, mask)

    # padded-flat -> NCHW (drop the padding ring); no transpose needed.
    return out_flat.reshape(N, C_out, Hp, Wp)[:, :, 1:1 + H, 1:1 + W]


if __name__ == "__main__":
    # DoubleConv(in_channels=4, out_channels=8) -> mid_channels=8, small spatial.
    N, C_in, C_mid, C_out, H, W = 2, 4, 8, 8, 16, 16
    eps = 1e-5

    key = jax.random.PRNGKey(0)
    (kx, kw1, kw2, kg1, kb1, km1, kv1, kg2, kb2, km2, kv2) = jax.random.split(key, 11)

    x = jax.random.normal(kx, (N, C_in, H, W), dtype=jnp.float32)

    bnd1 = 1.0 / jnp.sqrt(jnp.float32(C_in * 9))
    w1 = jax.random.uniform(kw1, (C_mid, C_in, 3, 3), jnp.float32, -bnd1, bnd1)
    bnd2 = 1.0 / jnp.sqrt(jnp.float32(C_mid * 9))
    w2 = jax.random.uniform(kw2, (C_out, C_mid, 3, 3), jnp.float32, -bnd2, bnd2)

    g1 = jax.random.uniform(kg1, (C_mid,), jnp.float32, 0.5, 1.5)
    be1 = 0.1 * jax.random.normal(kb1, (C_mid,), jnp.float32)
    m1 = 0.1 * jax.random.normal(km1, (C_mid,), jnp.float32)
    v1 = jax.random.uniform(kv1, (C_mid,), jnp.float32, 0.5, 1.5)

    g2 = jax.random.uniform(kg2, (C_out,), jnp.float32, 0.5, 1.5)
    be2 = 0.1 * jax.random.normal(kb2, (C_out,), jnp.float32)
    m2 = 0.1 * jax.random.normal(km2, (C_out,), jnp.float32)
    v2 = jax.random.uniform(kv2, (C_out,), jnp.float32, 0.5, 1.5)

    fwd = jax.jit(functools.partial(double_conv, eps=eps))
    y = fwd(x, w1, (g1, be1, m1, v1), w2, (g2, be2, m2, v2))
    y = jax.block_until_ready(y)

    # Pure-JAX reference with identical (eval-mode BN) semantics.
    def conv3x3(inp, w):
        return lax.conv_general_dilated(
            inp, w, window_strides=(1, 1), padding=((1, 1), (1, 1)),
            dimension_numbers=("NCHW", "OIHW", "NCHW"),
            precision=lax.Precision.HIGHEST)

    def bn_relu(t, g, b, m, v):
        s = g / jnp.sqrt(v + eps)
        return jnp.maximum(
            t * s[None, :, None, None] + (b - m * s)[None, :, None, None], 0.0)

    ref = bn_relu(conv3x3(x, w1), g1, be1, m1, v1)
    ref = bn_relu(conv3x3(ref, w2), g2, be2, m2, v2)

    assert y.shape == (N, C_out, H, W)
    max_err = float(jnp.max(jnp.abs(y - ref)))
    assert jnp.allclose(y, ref, atol=5e-4, rtol=5e-4), max_err

    print("KERNEL_OK")
</pallas_src>

<mosaic_0001>
module attributes {stable_mosaic.version = 11 : i64} {
  func.func @kernel(%arg0: i32, %arg1: memref<1x4x362xf32, #tpu.memory_space<vmem>>, %arg2: memref<9x8x4xf32, #tpu.memory_space<vmem>>, %arg3: memref<9x8x8xf32, #tpu.memory_space<vmem>>, %arg4: memref<8x1xf32, #tpu.memory_space<vmem>>, %arg5: memref<8x1xf32, #tpu.memory_space<vmem>>, %arg6: memref<8x1xf32, #tpu.memory_space<vmem>>, %arg7: memref<8x1xf32, #tpu.memory_space<vmem>>, %arg8: memref<1x324xf32, #tpu.memory_space<vmem>>, %arg9: memref<1x8x324xf32, #tpu.memory_space<vmem>>, %arg10: memref<8x362xf32, #tpu.memory_space<vmem>>) attributes {dimension_semantics = [#tpu.dimension_semantics<parallel>], iteration_bounds = array<i64: 2>, scalar_prefetch = 0 : i64, scratch_operands = 1 : i64, tpu.core_type = #tpu.core_type<tc>, window_params = [{transform_indices = @transform_0, window_bounds = array<i64: 1, 4, 362>}, {pipeline_mode = #tpu.pipeline_mode<synchronous>, transform_indices = @transform_1, window_bounds = array<i64: 9, 8, 4>}, {pipeline_mode = #tpu.pipeline_mode<synchronous>, transform_indices = @transform_2, window_bounds = array<i64: 9, 8, 8>}, {pipeline_mode = #tpu.pipeline_mode<synchronous>, transform_indices = @transform_3, window_bounds = array<i64: 8, 1>}, {pipeline_mode = #tpu.pipeline_mode<synchronous>, transform_indices = @transform_4, window_bounds = array<i64: 8, 1>}, {pipeline_mode = #tpu.pipeline_mode<synchronous>, transform_indices = @transform_5, window_bounds = array<i64: 8, 1>}, {pipeline_mode = #tpu.pipeline_mode<synchronous>, transform_indices = @transform_6, window_bounds = array<i64: 8, 1>}, {pipeline_mode = #tpu.pipeline_mode<synchronous>, transform_indices = @transform_7, window_bounds = array<i64: 1, 324>}, {transform_indices = @transform_8, window_bounds = array<i64: 1, 8, 324>}]} {
    %c0 = arith.constant 0 : index
    %c0_0 = arith.constant 0 : index
    %c0_1 = arith.constant 0 : index
    %0 = vector.load %arg1[%c0, %c0_0, %c0_1] : memref<1x4x362xf32, #tpu.memory_space<vmem>>, vector<1x4x362xf32>
    %1 = vector.shape_cast %0 : vector<1x4x362xf32> to vector<4x362xf32>
    %cst = arith.constant 0.000000e+00 : f32
    %2 = vector.broadcast %cst : f32 to vector<8x324xf32>
    %3 = vector.extract_strided_slice %1 {offsets = [0, 0], sizes = [4, 324], strides = [1, 1]} : vector<4x362xf32> to vector<4x324xf32>
    %c0_2 = arith.constant 0 : index
    %c0_3 = arith.constant 0 : index
    %c0_4 = arith.constant 0 : index
    %4 = vector.load %arg2[%c0_2, %c0_3, %c0_4] : memref<9x8x4xf32, #tpu.memory_space<vmem>>, vector<1x8x4xf32>
    %5 = vector.shape_cast %4 : vector<1x8x4xf32> to vector<8x4xf32>
    %cst_5 = arith.constant dense<0.000000e+00> : vector<8x324xf32>
    %6 = tpu.matmul %5, %3, %cst_5 {dimension_numbers = #tpu.dot_dimension_numbers<[1], [0], [0], [1], [0, 0, 1, 1], [], []>} : vector<8x4xf32>, vector<4x324xf32>, vector<8x324xf32> -> vector<8x324xf32>
    %7 = arith.addf %2, %6 : vector<8x324xf32>
    %8 = vector.extract_strided_slice %1 {offsets = [0, 1], sizes = [4, 324], strides = [1, 1]} : vector<4x362xf32> to vector<4x324xf32>
    %c1 = arith.constant 1 : index
    %c0_6 = arith.constant 0 : index
    %c0_7 = arith.constant 0 : index
    %9 = vector.load %arg2[%c1, %c0_6, %c0_7] : memref<9x8x4xf32, #tpu.memory_space<vmem>>, vector<1x8x4xf32>
    %10 = vector.shape_cast %9 : vector<1x8x4xf32> to vector<8x4xf32>
    %cst_8 = arith.constant dense<0.000000e+00> : vector<8x324xf32>
    %11 = tpu.matmul %10, %8, %cst_8 {dimension_numbers = #tpu.dot_dimension_numbers<[1], [0], [0], [1], [0, 0, 1, 1], [], []>} : vector<8x4xf32>, vector<4x324xf32>, vector<8x324xf32> -> vector<8x324xf32>
    %12 = arith.addf %7, %11 : vector<8x324xf32>
    %13 = vector.extract_strided_slice %1 {offsets = [0, 2], sizes = [4, 324], strides = [1, 1]} : vector<4x362xf32> to vector<4x324xf32>
    %c2 = arith.constant 2 : index
    %c0_9 = arith.constant 0 : index
    %c0_10 = arith.constant 0 : index
    %14 = vector.load %arg2[%c2, %c0_9, %c0_10] : memref<9x8x4xf32, #tpu.memory_space<vmem>>, vector<1x8x4xf32>
    %15 = vector.shape_cast %14 : vector<1x8x4xf32> to vector<8x4xf32>
    %cst_11 = arith.constant dense<0.000000e+00> : vector<8x324xf32>
    %16 = tpu.matmul %15, %13, %cst_11 {dimension_numbers = #tpu.dot_dimension_numbers<[1], [0], [0], [1], [0, 0, 1, 1], [], []>} : vector<8x4xf32>, vector<4x324xf32>, vector<8x324xf32> -> vector<8x324xf32>
    %17 = arith.addf %12, %16 : vector<8x324xf32>
    %18 = vector.extract_strided_slice %1 {offsets = [0, 18], sizes = [4, 324], strides = [1, 1]} : vector<4x362xf32> to vector<4x324xf32>
    %c3 = arith.constant 3 : index
    %c0_12 = arith.constant 0 : index
    %c0_13 = arith.constant 0 : index
    %19 = vector.load %arg2[%c3, %c0_12, %c0_13] : memref<9x8x4xf32, #tpu.memory_space<vmem>>, vector<1x8x4xf32>
    %20 = vector.shape_cast %19 : vector<1x8x4xf32> to vector<8x4xf32>
    %cst_14 = arith.constant dense<0.000000e+00> : vector<8x324xf32>
    %21 = tpu.matmul %20, %18, %cst_14 {dimension_numbers = #tpu.dot_dimension_numbers<[1], [0], [0], [1], [0, 0, 1, 1], [], []>} : vector<8x4xf32>, vector<4x324xf32>, vector<8x324xf32> -> vector<8x324xf32>
    %22 = arith.addf %17, %21 : vector<8x324xf32>
    %23 = vector.extract_strided_slice %1 {offsets = [0, 19], sizes = [4, 324], strides = [1, 1]} : vector<4x362xf32> to vector<4x324xf32>
    %c4 = arith.constant 4 : index
    %c0_15 = arith.constant 0 : index
    %c0_16 = arith.constant 0 : index
    %24 = vector.load %arg2[%c4, %c0_15, %c0_16] : memref<9x8x4xf32, #tpu.memory_space<vmem>>, vector<1x8x4xf32>
    %25 = vector.shape_cast %24 : vector<1x8x4xf32> to vector<8x4xf32>
    %cst_17 = arith.constant dense<0.000000e+00> : vector<8x324xf32>
    %26 = tpu.matmul %25, %23, %cst_17 {dimension_numbers = #tpu.dot_dimension_numbers<[1], [0], [0], [1], [0, 0, 1, 1], [], []>} : vector<8x4xf32>, vector<4x324xf32>, vector<8x324xf32> -> vector<8x324xf32>
    %27 = arith.addf %22, %26 : vector<8x324xf32>
    %28 = vector.extract_strided_slice %1 {offsets = [0, 20], sizes = [4, 324], strides = [1, 1]} : vector<4x362xf32> to vector<4x324xf32>
    %c5 = arith.constant 5 : index
    %c0_18 = arith.constant 0 : index
    %c0_19 = arith.constant 0 : index
    %29 = vector.load %arg2[%c5, %c0_18, %c0_19] : memref<9x8x4xf32, #tpu.memory_space<vmem>>, vector<1x8x4xf32>
    %30 = vector.shape_cast %29 : vector<1x8x4xf32> to vector<8x4xf32>
    %cst_20 = arith.constant dense<0.000000e+00> : vector<8x324xf32>
    %31 = tpu.matmul %30, %28, %cst_20 {dimension_numbers = #tpu.dot_dimension_numbers<[1], [0], [0], [1], [0, 0, 1, 1], [], []>} : vector<8x4xf32>, vector<4x324xf32>, vector<8x324xf32> -> vector<8x324xf32>
    %32 = arith.addf %27, %31 : vector<8x324xf32>
    %33 = vector.extract_strided_slice %1 {offsets = [0, 36], sizes = [4, 324], strides = [1, 1]} : vector<4x362xf32> to vector<4x324xf32>
    %c6 = arith.constant 6 : index
    %c0_21 = arith.constant 0 : index
    %c0_22 = arith.constant 0 : index
    %34 = vector.load %arg2[%c6, %c0_21, %c0_22] : memref<9x8x4xf32, #tpu.memory_space<vmem>>, vector<1x8x4xf32>
    %35 = vector.shape_cast %34 : vector<1x8x4xf32> to vector<8x4xf32>
    %cst_23 = arith.constant dense<0.000000e+00> : vector<8x324xf32>
    %36 = tpu.matmul %35, %33, %cst_23 {dimension_numbers = #tpu.dot_dimension_numbers<[1], [0], [0], [1], [0, 0, 1, 1], [], []>} : vector<8x4xf32>, vector<4x324xf32>, vector<8x324xf32> -> vector<8x324xf32>
    %37 = arith.addf %32, %36 : vector<8x324xf32>
    %38 = vector.extract_strided_slice %1 {offsets = [0, 37], sizes = [4, 324], strides = [1, 1]} : vector<4x362xf32> to vector<4x324xf32>
    %c7 = arith.constant 7 : index
    %c0_24 = arith.constant 0 : index
    %c0_25 = arith.constant 0 : index
    %39 = vector.load %arg2[%c7, %c0_24, %c0_25] : memref<9x8x4xf32, #tpu.memory_space<vmem>>, vector<1x8x4xf32>
    %40 = vector.shape_cast %39 : vector<1x8x4xf32> to vector<8x4xf32>
    %cst_26 = arith.constant dense<0.000000e+00> : vector<8x324xf32>
    %41 = tpu.matmul %40, %38, %cst_26 {dimension_numbers = #tpu.dot_dimension_numbers<[1], [0], [0], [1], [0, 0, 1, 1], [], []>} : vector<8x4xf32>, vector<4x324xf32>, vector<8x324xf32> -> vector<8x324xf32>
    %42 = arith.addf %37, %41 : vector<8x324xf32>
    %43 = vector.extract_strided_slice %1 {offsets = [0, 38], sizes = [4, 324], strides = [1, 1]} : vector<4x362xf32> to vector<4x324xf32>
    %c8 = arith.constant 8 : index
    %c0_27 = arith.constant 0 : index
    %c0_28 = arith.constant 0 : index
    %44 = vector.load %arg2[%c8, %c0_27, %c0_28] : memref<9x8x4xf32, #tpu.memory_space<vmem>>, vector<1x8x4xf32>
    %45 = vector.shape_cast %44 : vector<1x8x4xf32> to vector<8x4xf32>
    %cst_29 = arith.constant dense<0.000000e+00> : vector<8x324xf32>
    %46 = tpu.matmul %45, %43, %cst_29 {dimension_numbers = #tpu.dot_dimension_numbers<[1], [0], [0], [1], [0, 0, 1, 1], [], []>} : vector<8x4xf32>, vector<4x324xf32>, vector<8x324xf32> -> vector<8x324xf32>
    %47 = arith.addf %42, %46 : vector<8x324xf32>
    %c0_30 = arith.constant 0 : index
    %c0_31 = arith.constant 0 : index
    %48 = vector.load %arg4[%c0_30, %c0_31] : memref<8x1xf32, #tpu.memory_space<vmem>>, vector<8x1xf32>
    %49 = vector.broadcast %48 : vector<8x1xf32> to vector<8x324xf32>
    %50 = arith.mulf %47, %49 : vector<8x324xf32>
    %c0_32 = arith.constant 0 : index
    %c0_33 = arith.constant 0 : index
    %51 = vector.load %arg5[%c0_32, %c0_33] : memref<8x1xf32, #tpu.memory_space<vmem>>, vector<8x1xf32>
    %52 = vector.broadcast %51 : vector<8x1xf32> to vector<8x324xf32>
    %53 = arith.addf %50, %52 : vector<8x324xf32>
    %cst_34 = arith.constant 0.000000e+00 : f32
    %54 = vector.broadcast %cst_34 : f32 to vector<8x324xf32>
    %55 = arith.maximumf %53, %54 : vector<8x324xf32>
    %c0_35 = arith.constant 0 : index
    %c0_36 = arith.constant 0 : index
    %56 = vector.load %arg8[%c0_35, %c0_36] : memref<1x324xf32, #tpu.memory_space<vmem>>, vector<1x324xf32>
    %57 = vector.broadcast %56 : vector<1x324xf32> to vector<8x324xf32>
    %58 = arith.mulf %55, %57 : vector<8x324xf32>
    %cst_37 = arith.constant 0.000000e+00 : f32
    %59 = vector.broadcast %cst_37 : f32 to vector<8x362xf32>
    %c0_38 = arith.constant 0 : index
    %c0_39 = arith.constant 0 : index
    %60 = vector.load %arg10[%c0_38, %c0_39] : memref<8x362xf32, #tpu.memory_space<vmem>>, vector<8x362xf32>
    tpu.vector_store %arg10[%c0_38, %c0_39], %59 {strides = array<i32>} : memref<8x362xf32, #tpu.memory_space<vmem>>, vector<8x362xf32>,
    %c0_40 = arith.constant 0 : index
    %c19 = arith.constant 19 : index
    %61 = vector.load %arg10[%c0_40, %c19] : memref<8x362xf32, #tpu.memory_space<vmem>>, vector<8x324xf32>
    tpu.vector_store %arg10[%c0_40, %c19], %58 {strides = array<i32>} : memref<8x362xf32, #tpu.memory_space<vmem>>, vector<8x324xf32>,
    %c0_41 = arith.constant 0 : index
    %c0_42 = arith.constant 0 : index
    %62 = vector.load %arg10[%c0_41, %c0_42] : memref<8x362xf32, #tpu.memory_space<vmem>>, vector<8x362xf32>
    %cst_43 = arith.constant 0.000000e+00 : f32
    %63 = vector.broadcast %cst_43 : f32 to vector<8x324xf32>
    %64 = vector.extract_strided_slice %62 {offsets = [0, 0], sizes = [8, 324], strides = [1, 1]} : vector<8x362xf32> to vector<8x324xf32>
    %c0_44 = arith.constant 0 : index
    %c0_45 = arith.constant 0 : index
    %c0_46 = arith.constant 0 : index
    %65 = vector.load %arg3[%c0_44, %c0_45, %c0_46] : memref<9x8x8xf32, #tpu.memory_space<vmem>>, vector<1x8x8xf32>
    %66 = vector.shape_cast %65 : vector<1x8x8xf32> to vector<8x8xf32>
    %cst_47 = arith.constant dense<0.000000e+00> : vector<8x324xf32>
    %67 = tpu.matmul %66, %64, %cst_47 {dimension_numbers = #tpu.dot_dimension_numbers<[1], [0], [0], [1], [0, 0, 1, 1], [], []>} : vector<8x8xf32>, vector<8x324xf32>, vector<8x324xf32> -> vector<8x324xf32>
    %68 = arith.addf %63, %67 : vector<8x324xf32>
    %69 = vector.extract_strided_slice %62 {offsets = [0, 1], sizes = [8, 324], strides = [1, 1]} : vector<8x362xf32> to vector<8x324xf32>
    %c1_48 = arith.constant 1 : index
    %c0_49 = arith.constant 0 : index
    %c0_50 = arith.constant 0 : index
    %70 = vector.load %arg3[%c1_48, %c0_49, %c0_50] : memref<9x8x8xf32, #tpu.memory_space<vmem>>, vector<1x8x8xf32>
    %71 = vector.shape_cast %70 : vector<1x8x8xf32> to vector<8x8xf32>
    %cst_51 = arith.constant dense<0.000000e+00> : vector<8x324xf32>
    %72 = tpu.matmul %71, %69, %cst_51 {dimension_numbers = #tpu.dot_dimension_numbers<[1], [0], [0], [1], [0, 0, 1, 1], [], []>} : vector<8x8xf32>, vector<8x324xf32>, vector<8x324xf32> -> vector<8x324xf32>
    %73 = arith.addf %68, %72 : vector<8x324xf32>
    %74 = vector.extract_strided_slice %62 {offsets = [0, 2], sizes = [8, 324], strides = [1, 1]} : vector<8x362xf32> to vector<8x324xf32>
    %c2_52 = arith.constant 2 : index
    %c0_53 = arith.constant 0 : index
    %c0_54 = arith.constant 0 : index
    %75 = vector.load %arg3[%c2_52, %c0_53, %c0_54] : memref<9x8x8xf32, #tpu.memory_space<vmem>>, vector<1x8x8xf32>
    %76 = vector.shape_cast %75 : vector<1x8x8xf32> to vector<8x8xf32>
    %cst_55 = arith.constant dense<0.000000e+00> : vector<8x324xf32>
    %77 = tpu.matmul %76, %74, %cst_55 {dimension_numbers = #tpu.dot_dimension_numbers<[1], [0], [0], [1], [0, 0, 1, 1], [], []>} : vector<8x8xf32>, vector<8x324xf32>, vector<8x324xf32> -> vector<8x324xf32>
    %78 = arith.addf %73, %77 : vector<8x324xf32>
    %79 = vector.extract_strided_slice %62 {offsets = [0, 18], sizes = [8, 324], strides = [1, 1]} : vector<8x362xf32> to vector<8x324xf32>
    %c3_56 = arith.constant 3 : index
    %c0_57 = arith.constant 0 : index
    %c0_58 = arith.constant 0 : index
    %80 = vector.load %arg3[%c3_56, %c0_57, %c0_58] : memref<9x8x8xf32, #tpu.memory_space<vmem>>, vector<1x8x8xf32>
    %81 = vector.shape_cast %80 : vector<1x8x8xf32> to vector<8x8xf32>
    %cst_59 = arith.constant dense<0.000000e+00> : vector<8x324xf32>
    %82 = tpu.matmul %81, %79, %cst_59 {dimension_numbers = #tpu.dot_dimension_numbers<[1], [0], [0], [1], [0, 0, 1, 1], [], []>} : vector<8x8xf32>, vector<8x324xf32>, vector<8x324xf32> -> vector<8x324xf32>
    %83 = arith.addf %78, %82 : vector<8x324xf32>
    %84 = vector.extract_strided_slice %62 {offsets = [0, 19], sizes = [8, 324], strides = [1, 1]} : vector<8x362xf32> to vector<8x324xf32>
    %c4_60 = arith.constant 4 : index
    %c0_61 = arith.constant 0 : index
    %c0_62 = arith.constant 0 : index
    %85 = vector.load %arg3[%c4_60, %c0_61, %c0_62] : memref<9x8x8xf32, #tpu.memory_space<vmem>>, vector<1x8x8xf32>
    %86 = vector.shape_cast %85 : vector<1x8x8xf32> to vector<8x8xf32>
    %cst_63 = arith.constant dense<0.000000e+00> : vector<8x324xf32>
    %87 = tpu.matmul %86, %84, %cst_63 {dimension_numbers = #tpu.dot_dimension_numbers<[1], [0], [0], [1], [0, 0, 1, 1], [], []>} : vector<8x8xf32>, vector<8x324xf32>, vector<8x324xf32> -> vector<8x324xf32>
    %88 = arith.addf %83, %87 : vector<8x324xf32>
    %89 = vector.extract_strided_slice %62 {offsets = [0, 20], sizes = [8, 324], strides = [1, 1]} : vector<8x362xf32> to vector<8x324xf32>
    %c5_64 = arith.constant 5 : index
    %c0_65 = arith.constant 0 : index
    %c0_66 = arith.constant 0 : index
    %90 = vector.load %arg3[%c5_64, %c0_65, %c0_66] : memref<9x8x8xf32, #tpu.memory_space<vmem>>, vector<1x8x8xf32>
    %91 = vector.shape_cast %90 : vector<1x8x8xf32> to vector<8x8xf32>
    %cst_67 = arith.constant dense<0.000000e+00> : vector<8x324xf32>
    %92 = tpu.matmul %91, %89, %cst_67 {dimension_numbers = #tpu.dot_dimension_numbers<[1], [0], [0], [1], [0, 0, 1, 1], [], []>} : vector<8x8xf32>, vector<8x324xf32>, vector<8x324xf32> -> vector<8x324xf32>
    %93 = arith.addf %88, %92 : vector<8x324xf32>
    %94 = vector.extract_strided_slice %62 {offsets = [0, 36], sizes = [8, 324], strides = [1, 1]} : vector<8x362xf32> to vector<8x324xf32>
    %c6_68 = arith.constant 6 : index
    %c0_69 = arith.constant 0 : index
    %c0_70 = arith.constant 0 : index
    %95 = vector.load %arg3[%c6_68, %c0_69, %c0_70] : memref<9x8x8xf32, #tpu.memory_space<vmem>>, vector<1x8x8xf32>
    %96 = vector.shape_cast %95 : vector<1x8x8xf32> to vector<8x8xf32>
    %cst_71 = arith.constant dense<0.000000e+00> : vector<8x324xf32>
    %97 = tpu.matmul %96, %94, %cst_71 {dimension_numbers = #tpu.dot_dimension_numbers<[1], [0], [0], [1], [0, 0, 1, 1], [], []>} : vector<8x8xf32>, vector<8x324xf32>, vector<8x324xf32> -> vector<8x324xf32>
    %98 = arith.addf %93, %97 : vector<8x324xf32>
    %99 = vector.extract_strided_slice %62 {offsets = [0, 37], sizes = [8, 324], strides = [1, 1]} : vector<8x362xf32> to vector<8x324xf32>
    %c7_72 = arith.constant 7 : index
    %c0_73 = arith.constant 0 : index
    %c0_74 = arith.constant 0 : index
    %100 = vector.load %arg3[%c7_72, %c0_73, %c0_74] : memref<9x8x8xf32, #tpu.memory_space<vmem>>, vector<1x8x8xf32>
    %101 = vector.shape_cast %100 : vector<1x8x8xf32> to vector<8x8xf32>
    %cst_75 = arith.constant dense<0.000000e+00> : vector<8x324xf32>
    %102 = tpu.matmul %101, %99, %cst_75 {dimension_numbers = #tpu.dot_dimension_numbers<[1], [0], [0], [1], [0, 0, 1, 1], [], []>} : vector<8x8xf32>, vector<8x324xf32>, vector<8x324xf32> -> vector<8x324xf32>
    %103 = arith.addf %98, %102 : vector<8x324xf32>
    %104 = vector.extract_strided_slice %62 {offsets = [0, 38], sizes = [8, 324], strides = [1, 1]} : vector<8x362xf32> to vector<8x324xf32>
    %c8_76 = arith.constant 8 : index
    %c0_77 = arith.constant 0 : index
    %c0_78 = arith.constant 0 : index
    %105 = vector.load %arg3[%c8_76, %c0_77, %c0_78] : memref<9x8x8xf32, #tpu.memory_space<vmem>>, vector<1x8x8xf32>
    %106 = vector.shape_cast %105 : vector<1x8x8xf32> to vector<8x8xf32>
    %cst_79 = arith.constant dense<0.000000e+00> : vector<8x324xf32>
    %107 = tpu.matmul %106, %104, %cst_79 {dimension_numbers = #tpu.dot_dimension_numbers<[1], [0], [0], [1], [0, 0, 1, 1], [], []>} : vector<8x8xf32>, vector<8x324xf32>, vector<8x324xf32> -> vector<8x324xf32>
    %108 = arith.addf %103, %107 : vector<8x324xf32>
    %c0_80 = arith.constant 0 : index
    %c0_81 = arith.constant 0 : index
    %109 = vector.load %arg6[%c0_80, %c0_81] : memref<8x1xf32, #tpu.memory_space<vmem>>, vector<8x1xf32>
    %110 = vector.broadcast %109 : vector<8x1xf32> to vector<8x324xf32>
    %111 = arith.mulf %108, %110 : vector<8x324xf32>
    %c0_82 = arith.constant 0 : index
    %c0_83 = arith.constant 0 : index
    %112 = vector.load %arg7[%c0_82, %c0_83] : memref<8x1xf32, #tpu.memory_space<vmem>>, vector<8x1xf32>
    %113 = vector.broadcast %112 : vector<8x1xf32> to vector<8x324xf32>
    %114 = arith.addf %111, %113 : vector<8x324xf32>
    %cst_84 = arith.constant 0.000000e+00 : f32
    %115 = vector.broadcast %cst_84 : f32 to vector<8x324xf32>
    %116 = arith.maximumf %114, %115 : vector<8x324xf32>
    %c0_85 = arith.constant 0 : index
    %c0_86 = arith.constant 0 : index
    %117 = vector.load %arg8[%c0_85, %c0_86] : memref<1x324xf32, #tpu.memory_space<vmem>>, vector<1x324xf32>
    %118 = vector.broadcast %117 : vector<1x324xf32> to vector<8x324xf32>
    %119 = arith.mulf %116, %118 : vector<8x324xf32>
    %c0_87 = arith.constant 0 : index
    %c0_88 = arith.constant 0 : index
    %c0_89 = arith.constant 0 : index
    %120 = vector.load %arg9[%c0_87, %c0_88, %c0_89] : memref<1x8x324xf32, #tpu.memory_space<vmem>>, vector<1x8x324xf32>
    %121 = vector.shape_cast %120 : vector<1x8x324xf32> to vector<8x324xf32>
    %122 = vector.shape_cast %119 : vector<8x324xf32> to vector<1x8x324xf32>
    tpu.vector_store %arg9[%c0_87, %c0_88, %c0_89], %122 {strides = array<i32>} : memref<1x8x324xf32, #tpu.memory_space<vmem>>, vector<1x8x324xf32>,
    return
  }
  func.func @transform_0(%arg0: i32) -> (i32, i32, i32) {
    %c0_i32 = arith.constant 0 : i32
    %c0_i32_0 = arith.constant 0 : i32
    %c0_i32_1 = arith.constant 0 : i32
    return %arg0, %c0_i32, %c0_i32_0 : i32, i32, i32
  }
  func.func @transform_1(%arg0: i32) -> (i32, i32, i32) {
    %c0_i32 = arith.constant 0 : i32
    %c0_i32_0 = arith.constant 0 : i32
    %c0_i32_1 = arith.constant 0 : i32
    %c0_i32_2 = arith.constant 0 : i32
    return %c0_i32, %c0_i32_0, %c0_i32_1 : i32, i32, i32
  }
  func.func @transform_2(%arg0: i32) -> (i32, i32, i32) {
    %c0_i32 = arith.constant 0 : i32
    %c0_i32_0 = arith.constant 0 : i32
    %c0_i32_1 = arith.constant 0 : i32
    %c0_i32_2 = arith.constant 0 : i32
    return %c0_i32, %c0_i32_0, %c0_i32_1 : i32, i32, i32
  }
  func.func @transform_3(%arg0: i32) -> (i32, i32) {
    %c0_i32 = arith.constant 0 : i32
    %c0_i32_0 = arith.constant 0 : i32
    %c0_i32_1 = arith.constant 0 : i32
    return %c0_i32, %c0_i32_0 : i32, i32
  }
  func.func @transform_4(%arg0: i32) -> (i32, i32) {
    %c0_i32 = arith.constant 0 : i32
    %c0_i32_0 = arith.constant 0 : i32
    %c0_i32_1 = arith.constant 0 : i32
    return %c0_i32, %c0_i32_0 : i32, i32
  }
  func.func @transform_5(%arg0: i32) -> (i32, i32) {
    %c0_i32 = arith.constant 0 : i32
    %c0_i32_0 = arith.constant 0 : i32
    %c0_i32_1 = arith.constant 0 : i32
    return %c0_i32, %c0_i32_0 : i32, i32
  }
  func.func @transform_6(%arg0: i32) -> (i32, i32) {
    %c0_i32 = arith.constant 0 : i32
    %c0_i32_0 = arith.constant 0 : i32
    %c0_i32_1 = arith.constant 0 : i32
    return %c0_i32, %c0_i32_0 : i32, i32
  }
  func.func @transform_7(%arg0: i32) -> (i32, i32) {
    %c0_i32 = arith.constant 0 : i32
    %c0_i32_0 = arith.constant 0 : i32
    %c0_i32_1 = arith.constant 0 : i32
    return %c0_i32, %c0_i32_0 : i32, i32
  }
  func.func @transform_8(%arg0: i32) -> (i32, i32, i32) {
    %c0_i32 = arith.constant 0 : i32
    %c0_i32_0 = arith.constant 0 : i32
    %c0_i32_1 = arith.constant 0 : i32
    return %arg0, %c0_i32, %c0_i32_0 : i32, i32, i32
  }
}

</mosaic_0001>

<bundles_post_ra>
// kernel: double_conv.1
= control target key start
LH: loop header
LB: loop body
LE: loop exit
PB: predicated region body
PF: predicated region fallthrough
CT: control target
= control target key end

     0   :  { %s2178_s27 = smov 0   ;;  %s2455_s0 = inlined_call_operand.vmem [shape: f32[2,4,362], index: 0, kind: input, shape index: {}]   ;;  %s2456_s1 = inlined_call_operand.vmem [shape: f32[9,8,4], index: 1, kind: input, shape index: {}]   ;;  %s2457_s2 = inlined_call_operand.vmem [shape: f32[9,8,8], index: 2, kind: input, shape index: {}]   ;;  %s2458_s3 = inlined_call_operand.vmem [shape: f32[8,1], index: 3, kind: input, shape index: {}]   ;;  %s2459_s4 = inlined_call_operand.vmem [shape: f32[8,1], index: 4, kind: input, shape index: {}]   ;;  %s2460_s5 = inlined_call_operand.vmem [shape: f32[8,1], index: 5, kind: input, shape index: {}]   ;;  %s2461_s6 = inlined_call_operand.vmem [shape: f32[8,1], index: 6, kind: input, shape index: {}]   ;;  %s2462_s7 = inlined_call_operand.vmem [shape: f32[1,324], index: 7, kind: input, shape index: {}]   ;;  %s2463_s8 = inlined_call_operand.vmem [shape: f32[2,8,324], index: 8, kind: output, shape index: {}]  }
   0x1 LB: > { %s1944_s28 = sadd.s32 4294967295, %s2120_s27   ;;  %p1948_p0 = scmp.ge.s32.totalorder %s2120_s27, 1  ;;  %s2120_s27 = sphi %s2178_s27, %s18_s27  }
   0x2   : > { %p262_p1 = scmp.lt.s32.totalorder %s2120_s27, 3 }
   0x4   : > { %p263_p2 = pnand %p1948_p0, %p262_p1 }
   0x5   : > { %p296_p3 = scmp.lt.s32.totalorder (!%p263_p2), %s1944_s28, 1  ;;  %s2122_s11 = smov (!%p263_p2), 127  }
   0x6   : > { %266 = sbr.rel (%p263_p2) target bundleno = 769 (0x301), region = 52  ;;  %s2123_s12 = smov (!%p263_p2), 126  }
   0x7   : > { %s2124_s13 = smov (!%p263_p2), 110   ;;  %s2125_s14 = smov (!%p263_p2), 109  }
   0x8   : > { %s2126_s15 = smov (!%p263_p2), 108   ;;  %s2127_s16 = smov (!%p263_p2), 92  }
   0x9   : > { %s2128_s17 = smov (!%p263_p2), 91   ;;  %s2129_s18 = smov (!%p263_p2), 90  }
   0xa   : > { %s2132_s19 = smov (!%p263_p2), 19  }
   0xb   : > { %s2465_s28 = smov (!%p296_p3, %s1944_s28), 1  ;;  %vm332_vm0 = vcmask 1043456   ;;  %v308_v29 = vld [vmem:[%s2456_s1] sm:$0xff]  ;;  %vm328_vm1 = vcmask 31744   ;;  %vm488_vm2 = vcmask 1031168   ;;  %v1951_v32 = vld [vmem:[%s2456_s1 + $0x8] sm:$0xff] }
   0xc   : > { %s2050_s29 = smul.u32 12, %s2465_s28  ;;  %v1964_v35 = vld [vmem:[%s2456_s1 + $0x10] sm:$0xff]  ;;  %vm325_vm3 = vcmask 1039360   ;;  %v1971_v41 = vld [vmem:[%s2456_s1 + $0x18] sm:$0xff]  ;;  %vm577_vm4 = vcmask 900096   ;;  %vm666_vm5 = vcmask 891904  }
   0xd   : > { %v1978_v52 = vld [vmem:[%s2456_s1 + $0x20] sm:$0xff]  ;;  %v2130_v58 = vmov 0   ;;  %vm755_vm6 = vcmask 883712   ;;  %v1985_v61 = vld [vmem:[%s2456_s1 + $0x28] sm:$0xff]  ;;  %vm844_vm7 = vcmask 752640   ;;  %vm933_vm8 = vcmask 744448  }
   0xe   : > { %s300_s10 = scalar_lea.vmem %s2455_s0, %s2050_s29  ;;  %v1097_v55 = vld [vmem:[%s2458_s3] sm:$0xff]  ;;  %2071 = vset.pattern.permute.xlu0 %v2130_v58  ;;  %2072 = vset.pattern.permute.xlu1 %v2130_v58  ;;  %vm1022_vm9 = vcmask 736256   ;;  %vm1131_vm10 = vcmask 867328   ;;  %vm1148_vm11 = vcmask 1047704   ;;  %vm1142_vm12 = vcmask 154624  }
   0xf   : > { %v2192_v0 = vld [vmem:[%s300_s10] sm:$0xff]  ;;  %v2194_v1 = vld [vmem:[%s300_s10 + $0x8] sm:$0xf]  ;;  %2113 = vset.pattern.permute.xlu2 %v2130_v58  ;;  %vm1151_vm13 = vcmask 711680   ;;  %vm1173_vm14 = vcmask 64512   ;;  %vm1887_vm15 = vcmask 556032  }
  0x10   : > { %313 = vst [vmem:[#allocation1] ss:$2 sm:$0xff] %v2192_v0  ;;  %v1106_v56 = vld [vmem:[%s2459_s4] sm:$0xff] }
  0x11   : > { %315 = vst [vmem:[#allocation1 + $0x10] ss:$2 sm:$0xff] %v2194_v1 }
  0x17   : > { %v316_v2 = vld.sshfl [vmem:[#allocation1] sm:$0xff pattern:$0x75316420]  ;;  %v317_v3 = vld.sshfl [vmem:[#allocation1 + $0x8] sm:$0xff pattern:$0x75316420] }
  0x18   : > { %319 = vrot.lane.b32.xlu0 %v316_v2, %s2122_s11  ;;  %v318_v4 = vld.sshfl [vmem:[#allocation1 + $0x10] sm:$0xff pattern:$0x75316420]  ;;  %399 = vst [vmem:[#allocation1] ss:$2 sm:$0xff] %v2192_v0 }
  0x19   : > { %323 = vrot.lane.b32.xlu1 %v318_v4, %s2122_s11  ;;  %401 = vst [vmem:[#allocation1 + $0x10] ss:$2 sm:$0xff] %v2194_v1 }
  0x1f   : > { %v2202_v5 = vld.sshfl [vmem:[#allocation1] sm:$0xff pattern:$0x75316420]  ;;  %v2204_v6 = vld.sshfl [vmem:[#allocation1 + $0x8] sm:$0xff pattern:$0x75316420] }
  0x20   : > { %321 = vrot.lane.b32.xlu0 %v317_v3, %s2122_s11  ;;  %476 = vst [vmem:[#allocation1] ss:$2 sm:$0xff] %v2192_v0  ;;  %v2208_v7 = vld.sshfl [vmem:[#allocation1 + $0x10] sm:$0xff pattern:$0x75316420]  ;;  %1958 = vmatpush.msk.msra.mxu3 %vm332_vm0, %v2202_v5 }
  0x21   : > { %478 = vst [vmem:[#allocation1 + $0x10] ss:$2 sm:$0xff] %v2194_v1  ;;  %1959 = vmatmul.msk.f32.vlgmr.msra.gmra.mxu3 %vm328_vm1, %v308_v29  ;;  %v1992_v3 = vld [vmem:[%s2456_s1 + $0x30] sm:$0xff] }
  0x27   : > { %v479_v8 = vld.sshfl [vmem:[#allocation1] sm:$0xff pattern:$0x75316420]  ;;  %v480_v9 = vld.sshfl [vmem:[#allocation1 + $0x8] sm:$0xff pattern:$0x75316420] }
  0x28   : > { %482 = vrot.lane.b32.xlu1 %v479_v8, %s2123_s12  ;;  %484 = vrot.lane.b32.xlu2 %v480_v9, %s2123_s12  ;;  %565 = vst [vmem:[#allocation1] ss:$2 sm:$0xff] %v2192_v0  ;;  %v481_v10 = vld.sshfl [vmem:[#allocation1 + $0x10] sm:$0xff pattern:$0x75316420]  ;;  %v1999_v8 = vld [vmem:[%s2456_s1 + $0x38] sm:$0xff] }
  0x29   : > { %567 = vst [vmem:[#allocation1 + $0x10] ss:$2 sm:$0xff] %v2194_v1 }
  0x2f   : > { %v569_v11 = vld.sshfl [vmem:[#allocation1 + $0x8] sm:$0xff pattern:$0x75316420]  ;;  %v568_v12 = vld.sshfl [vmem:[#allocation1] sm:$0xff pattern:$0x75316420] }
  0x30   : > { %573 = vrot.lane.b32.xlu1 %v569_v11, %s2124_s13  ;;  %571 = vrot.lane.b32.xlu0 %v568_v12, %s2124_s13  ;;  %654 = vst [vmem:[#allocation1] ss:$2 sm:$0xff] %v2192_v0  ;;  %v570_v13 = vld.sshfl [vmem:[#allocation1 + $0x10] sm:$0xff pattern:$0x75316420] }
  0x31   : > { %486 = vrot.lane.b32.xlu2 %v481_v10, %s2123_s12  ;;  %656 = vst [vmem:[#allocation1 + $0x10] ss:$2 sm:$0xff] %v2194_v1 }
  0x37   : > { %v658_v14 = vld.sshfl [vmem:[#allocation1 + $0x8] sm:$0xff pattern:$0x75316420]  ;;  %v657_v15 = vld.sshfl [vmem:[#allocation1] sm:$0xff pattern:$0x75316420] }
  0x38   : > { %662 = vrot.lane.b32.xlu1 %v658_v14, %s2125_s14  ;;  %660 = vrot.lane.b32.xlu0 %v657_v15, %s2125_s14  ;;  %743 = vst [vmem:[#allocation1] ss:$2 sm:$0xff] %v2192_v0  ;;  %v659_v16 = vld.sshfl [vmem:[#allocation1 + $0x10] sm:$0xff pattern:$0x75316420]  ;;  %v2006_v14 = vld [vmem:[%s2456_s1 + $0x40] sm:$0xff] }
  0x39   : > { %575 = vrot.lane.b32.xlu2 %v570_v13, %s2124_s13  ;;  %745 = vst [vmem:[#allocation1 + $0x10] ss:$2 sm:$0xff] %v2194_v1 }
  0x3f   : > { %v747_v17 = vld.sshfl [vmem:[#allocation1 + $0x8] sm:$0xff pattern:$0x75316420]  ;;  %v746_v18 = vld.sshfl [vmem:[#allocation1] sm:$0xff pattern:$0x75316420] }
  0x40   : > { %751 = vrot.lane.b32.xlu1 %v747_v17, %s2126_s15  ;;  %749 = vrot.lane.b32.xlu0 %v746_v18, %s2126_s15  ;;  %832 = vst [vmem:[#allocation1] ss:$2 sm:$0xff] %v2192_v0  ;;  %v748_v19 = vld.sshfl [vmem:[#allocation1 + $0x10] sm:$0xff pattern:$0x75316420] }
  0x41   : > { %664 = vrot.lane.b32.xlu2 %v659_v16, %s2125_s14  ;;  %834 = vst [vmem:[#allocation1 + $0x10] ss:$2 sm:$0xff] %v2194_v1 }
  0x47   : > { %v836_v20 = vld.sshfl [vmem:[#allocation1 + $0x8] sm:$0xff pattern:$0x75316420]  ;;  %v835_v21 = vld.sshfl [vmem:[#allocation1] sm:$0xff pattern:$0x75316420] }
  0x48   : > { %840 = vrot.lane.b32.xlu1 %v836_v20, %s2127_s16  ;;  %838 = vrot.lane.b32.xlu0 %v835_v21, %s2127_s16  ;;  %921 = vst [vmem:[#allocation1] ss:$2 sm:$0xff] %v2192_v0  ;;  %v837_v22 = vld.sshfl [vmem:[#allocation1 + $0x10] sm:$0xff pattern:$0x75316420] }
  0x49   : > { %753 = vrot.lane.b32.xlu2 %v748_v19, %s2126_s15  ;;  %923 = vst [vmem:[#allocation1 + $0x10] ss:$2 sm:$0xff] %v2194_v1 }
  0x4f   : > { %v925_v23 = vld.sshfl [vmem:[#allocation1 + $0x8] sm:$0xff pattern:$0x75316420]  ;;  %v924_v24 = vld.sshfl [vmem:[#allocation1] sm:$0xff pattern:$0x75316420] }
  0x50   : > { %929 = vrot.lane.b32.xlu1 %v925_v23, %s2128_s17  ;;  %927 = vrot.lane.b32.xlu0 %v924_v24, %s2128_s17  ;;  %1010 = vst [vmem:[#allocation1] ss:$2 sm:$0xff] %v2192_v0  ;;  %v926_v25 = vld.sshfl [vmem:[#allocation1 + $0x10] sm:$0xff pattern:$0x75316420] }
  0x51   : > { %842 = vrot.lane.b32.xlu2 %v837_v22, %s2127_s16  ;;  %1012 = vst [vmem:[#allocation1 + $0x10] ss:$2 sm:$0xff] %v2194_v1 }
  0x57   : > { %v1014_v26 = vld.sshfl [vmem:[#allocation1 + $0x8] sm:$0xff pattern:$0x75316420]  ;;  %v1013_v27 = vld.sshfl [vmem:[#allocation1] sm:$0xff pattern:$0x75316420] }
  0x58   : > { %1018 = vrot.lane.b32.xlu1 %v1014_v26, %s2129_s18  ;;  %1016 = vrot.lane.b32.xlu0 %v1013_v27, %s2129_s18  ;;  %v1015_v28 = vld.sshfl [vmem:[#allocation1 + $0x10] sm:$0xff pattern:$0x75316420] }
  0x59   : > { %931 = vrot.lane.b32.xlu2 %v926_v25, %s2128_s17 }
  0x60   : > { %1100 = vperm.xlu0 %2071, %v1097_v55   ;;  %1109 = vperm.xlu1 %2072, %v1106_v56  }
  0x61   : > { %1020 = vrot.lane.b32.xlu2 %v1015_v28, %s2129_s18 }
  0x82   : > { %v485_v30 = vpop.permute.xlu2 %484 }
  0x8a   : > { %v320_v31 = vpop.permute.xlu0 %319 }
  0x8b   : > { %v324_v33 = vpop.permute.xlu1 %323  ;;  %v487_v34 = vpop.permute.xlu2 %486 }
  0x8c   : > { %1956 = vmatpush.msk.msra.mxu2 %vm332_vm0, %v324_v33  ;;  %v490_v36 = vsel %vm488_vm2, %v485_v30, %v487_v34 }
  0x8d   : > { %1967 = vmatpush.msk.msrb.mxu3 %vm332_vm0, %v490_v36  ;;  %1957 = vmatmul.msk.f32.vlgmr.msra.gmra.mxu2 %vm328_vm1, %v1951_v32 }
  0x8e   : > { %1968 = vmatmul.msk.f32.vlgmr.msrb.gmra.mxu3 %vm328_vm1, %v1964_v35 }
  0x92   : > { %v322_v37 = vpop.permute.xlu0 %321 }
  0x93   : > { %v326_v38 = vsel %vm325_vm3, %v320_v31, %v322_v37  ;;  %v327_v39 = vsel %vm325_vm3, %v322_v37, %v324_v33  ;;  %v576_v40 = vpop.permute.xlu2 %575 }
  0x94   : > { %1952 = vmatpush.msk.msra.mxu0 %vm332_vm0, %v326_v38  ;;  %1954 = vmatpush.msk.msra.mxu1 %vm332_vm0, %v327_v39 }
  0x95   : > { %1953 = vmatmul.msk.f32.vlgmr.msra.gmra.mxu0 %vm328_vm1, %v1951_v32  ;;  %1955 = vmatmul.msk.f32.vlgmr.msra.gmra.mxu1 %vm328_vm1, %v1951_v32 }
  0x96   : > { %1960 = vmatpush.msk.msrb.mxu0 %vm332_vm0, %v2204_v6  ;;  %1962 = vmatpush.msk.msrb.mxu1 %vm332_vm0, %v2208_v7 }
  0x97   : > { %1976 = vmatpush.msk.msra.mxu3 %vm332_vm0, %v576_v40 }
  0x98   : > { %1969 = vmatpush.msk.msra.mxu0 %vm332_vm0, %v487_v34  ;;  %1977 = vmatmul.msk.f32.vlgmr.msra.gmra.mxu3 %vm328_vm1, %v1971_v41 }
  0x9a   : > { %v483_v42 = vpop.permute.xlu1 %482 }
  0x9b   : > { %v489_v43 = vsel %vm488_vm2, %v483_v42, %v485_v30  ;;  %v665_v44 = vpop.permute.xlu2 %664 }
  0x9c   : > { %1965 = vmatpush.msk.msrb.mxu2 %vm332_vm0, %v489_v43 }
  0x9d   : > { %1961 = vmatmul.msk.f32.vlgmr.msrb.gmra.mxu0 %vm328_vm1, %v308_v29  ;;  %1963 = vmatmul.msk.f32.vlgmr.msrb.gmra.mxu1 %vm328_vm1, %v308_v29 }
  0x9e   : > { %1966 = vmatmul.msk.f32.vlgmr.msrb.gmra.mxu2 %vm328_vm1, %v1964_v35 }
  0xa2   : > { %v574_v45 = vpop.permute.xlu1 %573  ;;  %v572_v46 = vpop.permute.xlu0 %571 }
  0xa3   : > { %v579_v47 = vsel %vm577_vm4, %v574_v45, %v576_v40  ;;  %v578_v48 = vsel %vm577_vm4, %v572_v46, %v574_v45  ;;  %v754_v49 = vpop.permute.xlu2 %753 }
  0xa4   : > { %1972 = vmatpush.msk.msra.mxu1 %vm332_vm0, %v578_v48  ;;  %1974 = vmatpush.msk.msra.mxu2 %vm332_vm0, %v579_v47  ;;  %v431_v22 = vpop.f32.mrf.mxu3 }
  0xa5   : > { %1970 = vmatmul.msk.f32.vlgmr.msra.gmra.mxu0 %vm328_vm1, %v1964_v35  ;;  %1973 = vmatmul.msk.f32.vlgmr.msra.gmra.mxu1 %vm328_vm1, %v1971_v41 }
  0xa6   : > { %1975 = vmatmul.msk.f32.vlgmr.msra.gmra.mxu2 %vm328_vm1, %v1971_v41  ;;  %v2131_v41 = vmov 0.0  }
  0xa7   : > { %1983 = vmatpush.msk.msrb.mxu2 %vm332_vm0, %v665_v44  ;;  %1129 = vst [vmem:[#allocation2] sm:$0xff] %v2131_v41 }
  0xa8   : > { %1132 = vst.msk [vmem:[#allocation2 + $0x10] sm:$0xff] %vm1131_vm10, %v2131_v41 }
  0xaa   : > { %v663_v50 = vpop.permute.xlu1 %662  ;;  %v661_v51 = vpop.permute.xlu0 %660 }
  0xab   : > { %v668_v53 = vsel %vm666_vm5, %v663_v50, %v665_v44  ;;  %v667_v54 = vsel %vm666_vm5, %v661_v51, %v663_v50  ;;  %v843_v57 = vpop.permute.xlu2 %842 }
  0xac   : > { %1979 = vmatpush.msk.msrb.mxu0 %vm332_vm0, %v667_v54  ;;  %1981 = vmatpush.msk.msrb.mxu1 %vm332_vm0, %v668_v53 }
  0xad   : > { %1980 = vmatmul.msk.f32.vlgmr.msrb.gmra.mxu0 %vm328_vm1, %v1978_v52  ;;  %1982 = vmatmul.msk.f32.vlgmr.msrb.gmra.mxu1 %vm328_vm1, %v1978_v52 }
  0xae   : > { %1984 = vmatmul.msk.f32.vlgmr.msrb.gmra.mxu2 %vm328_vm1, %v1978_v52  ;;  %1990 = vmatpush.msk.msra.mxu1 %vm332_vm0, %v754_v49 }
  0xb2   : > { %v752_v59 = vpop.permute.xlu1 %751  ;;  %v750_v60 = vpop.permute.xlu0 %749 }
  0xb3   : > { %v757_v62 = vsel %vm755_vm6, %v752_v59, %v754_v49  ;;  %v756_v63 = vsel %vm755_vm6, %v750_v60, %v752_v59  ;;  %v932_v0 = vpop.permute.xlu2 %931 }
  0xb4   : > { %1986 = vmatpush.msk.msrb.mxu3 %vm332_vm0, %v756_v63  ;;  %1988 = vmatpush.msk.msra.mxu0 %vm332_vm0, %v757_v62 }
  0xb5   : > { %1987 = vmatmul.msk.f32.vlgmr.msrb.gmra.mxu3 %vm328_vm1, %v1985_v61  ;;  %1989 = vmatmul.msk.f32.vlgmr.msra.gmra.mxu0 %vm328_vm1, %v1985_v61 }
  0xb6   : > { %1991 = vmatmul.msk.f32.vlgmr.msra.gmra.mxu1 %vm328_vm1, %v1985_v61  ;;  %1997 = vmatpush.msk.msrb.mxu0 %vm332_vm0, %v843_v57 }
  0xba   : > { %v841_v1 = vpop.permute.xlu1 %840  ;;  %v839_v2 = vpop.permute.xlu0 %838 }
  0xbb   : > { %v846_v4 = vsel %vm844_vm7, %v841_v1, %v843_v57  ;;  %v845_v5 = vsel %vm844_vm7, %v839_v2, %v841_v1  ;;  %v1021_v11 = vpop.permute.xlu2 %1020  ;;  %v1118_v2 = vld [vmem:[%s2462_s7] sm:$0x7] }
  0xbc   : > { %1993 = vmatpush.msk.msra.mxu2 %vm332_vm0, %v845_v5  ;;  %1995 = vmatpush.msk.msra.mxu3 %vm332_vm0, %v846_v4 }
  0xbd   : > { %1994 = vmatmul.msk.f32.vlgmr.msra.gmra.mxu2 %vm328_vm1, %v1992_v3  ;;  %1996 = vmatmul.msk.f32.vlgmr.msra.gmra.mxu3 %vm328_vm1, %v1992_v3 }
  0xbe   : > { %1998 = vmatmul.msk.f32.vlgmr.msrb.gmra.mxu0 %vm328_vm1, %v1992_v3  ;;  %2004 = vmatpush.msk.msrb.mxu3 %vm332_vm0, %v932_v0 }
  0xc2   : > { %v930_v6 = vpop.permute.xlu1 %929  ;;  %v928_v7 = vpop.permute.xlu0 %927 }
  0xc3   : > { %v935_v9 = vsel %vm933_vm8, %v930_v6, %v932_v0  ;;  %v934_v10 = vsel %vm933_vm8, %v928_v7, %v930_v6 }
  0xc4   : > { %2000 = vmatpush.msk.msrb.mxu1 %vm332_vm0, %v934_v10  ;;  %2002 = vmatpush.msk.msrb.mxu2 %vm332_vm0, %v935_v9  ;;  %v1121_v9 = vperm.slane %v1118_v2, 1  ;;  %v1120_v10 = vperm.slane %v1118_v2, 0 }
  0xc5   : > { %2001 = vmatmul.msk.f32.vlgmr.msrb.gmra.mxu1 %vm328_vm1, %v1999_v8  ;;  %2003 = vmatmul.msk.f32.vlgmr.msrb.gmra.mxu2 %vm328_vm1, %v1999_v8 }
  0xc6   : > { %2005 = vmatmul.msk.f32.vlgmr.msrb.gmra.mxu3 %vm328_vm1, %v1999_v8  ;;  %2011 = vmatpush.msk.msra.mxu2 %vm332_vm0, %v1021_v11 }
  0xca   : > { %v1019_v12 = vpop.permute.xlu1 %1018  ;;  %v1017_v13 = vpop.permute.xlu0 %1016 }
  0xcb   : > { %v1024_v15 = vsel %vm1022_vm9, %v1019_v12, %v1021_v11  ;;  %v1023_v16 = vsel %vm1022_vm9, %v1017_v13, %v1019_v12 }
  0xcc   : > { %2007 = vmatpush.msk.msra.mxu0 %vm332_vm0, %v1023_v16  ;;  %2009 = vmatpush.msk.msra.mxu1 %vm332_vm0, %v1024_v15 }
  0xcd   : > { %2008 = vmatmul.msk.f32.vlgmr.msra.gmra.mxu0 %vm328_vm1, %v2006_v14  ;;  %2010 = vmatmul.msk.f32.vlgmr.msra.gmra.mxu1 %vm328_vm1, %v2006_v14 }
  0xce   : > { %2012 = vmatmul.msk.f32.vlgmr.msra.gmra.mxu2 %vm328_vm1, %v2006_v14 }
  0xd2   : > { %v1101_v59 = vpop.permute.xlu0 %1100  ;;  %v1110_v1 = vpop.permute.xlu1 %1109 }
 0x110   : > { %v396_v19 = vpop.f32.mrf.mxu2 }
 0x111   : > { %v537_v26 = vpop.f32.mrf.mxu3 }
 0x112   : > { %v356_v17 = vpop.f32.mrf.mxu0  ;;  %v376_v18 = vpop.f32.mrf.mxu1 }
 0x113   : > { %v432_v31 = vadd.f32 %v431_v22, %v356_v17 }
 0x11a   : > { %v451_v20 = vpop.f32.mrf.mxu0  ;;  %v471_v21 = vpop.f32.mrf.mxu1 }
 0x11b   : > { %v646_v30 = vpop.f32.mrf.mxu3  ;;  %v452_v34 = vadd.f32 %v451_v20, %v376_v18  ;;  %v472_v40 = vadd.f32 %v471_v21, %v396_v19  ;;  %v1122_v20 = vperm.slane %v1118_v2, 2 }
 0x11d   : > { %v561_v38 = vadd.f32 %v537_v26, %v452_v34 }
 0x121   : > { %v517_v23 = vpop.f32.mrf.mxu2 }
 0x122   : > { %v557_v24 = vpop.f32.mrf.mxu0  ;;  %v606_v25 = vpop.f32.mrf.mxu1  ;;  %v560_v35 = vadd.f32 %v517_v23, %v432_v31  ;;  %v1853_v31 = vld [vmem:[%s2460_s5] sm:$0xff] }
 0x123   : > { %v562_v45 = vadd.f32 %v557_v24, %v472_v40 }
 0x124   : > { %v649_v39 = vadd.f32 %v606_v25, %v560_v35 }
 0x125   : > { %v651_v53 = vadd.f32 %v646_v30, %v562_v45 }
 0x129   : > { %v626_v27 = vpop.f32.mrf.mxu2 }
 0x12a   : > { %v695_v28 = vpop.f32.mrf.mxu0  ;;  %v715_v29 = vpop.f32.mrf.mxu1  ;;  %v650_v42 = vadd.f32 %v626_v27, %v561_v38  ;;  %v2013_v38 = vld [vmem:[%s2457_s2 + $0x8] sm:$0xff] }
 0x12b   : > { %v738_v44 = vadd.f32 %v695_v28, %v649_v39 }
 0x12c   : > { %v739_v48 = vadd.f32 %v715_v29, %v650_v42 }
 0x131   : > { %v735_v32 = vpop.f32.mrf.mxu2 }
 0x132   : > { %v804_v33 = vpop.f32.mrf.mxu0  ;;  %v740_v55 = vadd.f32 %v735_v32, %v651_v53  ;;  %v1156_v32 = vld [vmem:[%s2457_s2] sm:$0xff] }
 0x133   : > { %v824_v37 = vpop.f32.mrf.mxu1  ;;  %v828_v51 = vadd.f32 %v804_v33, %v739_v48 }
 0x134   : > { %v829_v0 = vadd.f32 %v824_v37, %v740_v55 }
 0x138   : > { %v784_v36 = vpop.f32.mrf.mxu3 }
 0x139   : > { %v827_v49 = vadd.f32 %v784_v36, %v738_v44 }
 0x13b   : > { %v913_v46 = vpop.f32.mrf.mxu0 }
 0x13c   : > { %v918_v6 = vadd.f32 %v913_v46, %v829_v0 }
 0x140   : > { %v873_v43 = vpop.f32.mrf.mxu2  ;;  %v893_v50 = vpop.f32.mrf.mxu3 }
 0x141   : > { %v916_v52 = vadd.f32 %v873_v43, %v827_v49  ;;  %v917_v54 = vadd.f32 %v893_v50, %v828_v51  ;;  %v2020_v50 = vld [vmem:[%s2457_s2 + $0x10] sm:$0xff] }
 0x142   : > { %v962_v47 = vpop.f32.mrf.mxu1 }
 0x143   : > { %v1005_v57 = vadd.f32 %v962_v47, %v916_v52 }
 0x148   : > { %v982_v56 = vpop.f32.mrf.mxu2 }
 0x149   : > { %v1006_v58 = vadd.f32 %v982_v56, %v917_v54  ;;  %v1002_v3 = vpop.f32.mrf.mxu3 }
 0x14a   : > { %v1051_v60 = vpop.f32.mrf.mxu0  ;;  %v1071_v61 = vpop.f32.mrf.mxu1  ;;  %v1007_v11 = vadd.f32 %v1002_v3, %v918_v6  ;;  %v2028_v3 = vld [vmem:[%s2457_s2 + $0x20] sm:$0xff] }
 0x14b   : > { %v1094_v62 = vadd.f32 %v1051_v60, %v1005_v57  ;;  %v1095_v63 = vadd.f32 %v1071_v61, %v1006_v58  ;;  %v2024_v61 = vld [vmem:[%s2457_s2 + $0x18] sm:$0xff] }
 0x14d   : > { %v1103_v4 = vmul.f32 %v1101_v59, %v1094_v62  ;;  %v1104_v5 = vmul.f32 %v1101_v59, %v1095_v63 }
 0x14f   : > { %v1112_v7 = vadd.f32 %v1110_v1, %v1103_v4  ;;  %v1113_v8 = vadd.f32 %v1110_v1, %v1104_v5  ;;  %v1862_v4 = vld [vmem:[%s2461_s6] sm:$0xff]  ;;  %v2032_v5 = vld [vmem:[%s2457_s2 + $0x28] sm:$0xff] }
 0x151   : > { %v1115_v12 = vmax.f32 %v1112_v7, 0.0  ;;  %v1116_v13 = vmax.f32 %v1113_v8, 0.0  ;;  %v1091_v14 = vpop.f32.mrf.mxu2 }
 0x152   : > { %v1096_v15 = vadd.f32 %v1091_v14, %v1007_v11 }
 0x153   : > { %v1127_v16 = vmul.f32 %v1121_v9, %v1116_v13  ;;  %v1126_v17 = vmul.f32 %v1120_v10, %v1115_v12 }
 0x154   : > { %v1105_v18 = vmul.f32 %v1101_v59, %v1096_v15 }
 0x155   : > { %1138 = vrot.lane.b32.xlu1 %v1127_v16, %s2132_s19  ;;  %1136 = vrot.lane.b32.xlu2 %v1126_v17, %s2132_s19 }
 0x156   : > { %v1114_v19 = vadd.f32 %v1110_v1, %v1105_v18  ;;  %v2036_v18 = vld [vmem:[%s2457_s2 + $0x30] sm:$0xff] }
 0x158   : > { %v1117_v21 = vmax.f32 %v1114_v19, 0.0 }
 0x15a   : > { %v1128_v22 = vmul.f32 %v1122_v20, %v1117_v21 }
 0x15d   : > { %1140 = vrot.lane.b32.xlu2 %v1128_v22, %s2132_s19 }
 0x1af   : > { %v1137_v23 = vpop.permute.xlu2 %1136 }
 0x1b0   : > { %1149 = vst.msk [vmem:[#allocation2] sm:$0xff] %vm1148_vm11, %v1137_v23 }
 0x1b7   : > { %v1153_v24 = vld [vmem:[#allocation2] sm:$0xff]  ;;  %v1141_v25 = vpop.permute.xlu2 %1140 }
 0x1b8   : > { %1255 = vmatpush.msrb.mxu2 %v1153_v24 }
 0x1b9   : > { %2017 = vmatmul.msk.f32.vlgmr.msrb.gmra.mxu2 %vm1173_vm14, %v1156_v32 }
 0x1c7   : > { %v1139_v26 = vpop.permute.xlu1 %1138 }
 0x1c8   : > { %v1143_v27 = vsel %vm1142_vm12, %v1137_v23, %v1139_v26  ;;  %v1144_v28 = vsel %vm1142_vm12, %v1139_v26, %v1141_v25  ;;  %v2044_v25 = vld [vmem:[%s2457_s2 + $0x40] sm:$0xff] }
 0x1c9   : > { %v2078_v29 = vpack.i.bf16 %v1143_v27, %v1153_v24  ;;  %1152 = vst.msk [vmem:[#allocation2 + $0x10] sm:$0xff] %vm1151_vm13, %v1144_v28  ;;  %v2040_v24 = vld [vmem:[%s2457_s2 + $0x38] sm:$0xff] }
 0x1cb   : > { %2079 = vrot.lane.b32.xlu2 %v2078_v29, %s2123_s12  ;;  %2074 = vrot.lane.b32.xlu0 %v2078_v29, %s2122_s11 }
 0x1d0   : > { %v1155_v30 = vld [vmem:[#allocation2 + $0x10] sm:$0xff] }
 0x1d1   : > { %1166 = vrot.lane.b32.xlu1 %v1155_v30, %s2122_s11 }
 0x1d3   : > { %1385 = vrot.lane.b32.xlu2 %v1155_v30, %s2124_s13  ;;  %1306 = vrot.lane.b32.xlu0 %v1155_v30, %s2123_s12 }
 0x1d9   : > { %2084 = vrot.lane.b32.xlu1 %v2078_v29, %s2124_s13 }
 0x1db   : > { %2094 = vrot.lane.b32.xlu2 %v2078_v29, %s2126_s15  ;;  %2089 = vrot.lane.b32.xlu0 %v2078_v29, %s2125_s14 }
 0x1e1   : > { %1464 = vrot.lane.b32.xlu1 %v1155_v30, %s2125_s14 }
 0x1e3   : > { %1622 = vrot.lane.b32.xlu2 %v1155_v30, %s2127_s16  ;;  %1543 = vrot.lane.b32.xlu0 %v1155_v30, %s2126_s15  ;;  %s2051_s15 = smul.u32 24, %s2465_s28 }
 0x1e9   : > { %2099 = vrot.lane.b32.xlu1 %v2078_v29, %s2127_s16 }
 0x1eb   : > { %2109 = vrot.lane.b32.xlu2 %v2078_v29, %s2129_s18  ;;  %2104 = vrot.lane.b32.xlu0 %v2078_v29, %s2128_s17 }
 0x1f1   : > { %1701 = vrot.lane.b32.xlu1 %v1155_v30, %s2128_s17 }
 0x1f3   : > { %1780 = vrot.lane.b32.xlu0 %v1155_v30, %s2129_s18  ;;  %1865 = vperm.xlu2 %2113, %v1862_v4   ;;  %s305_s18 = scalar_lea.vmem %s2463_s8, %s2051_s15 }
 0x1f9   : > { %1856 = vperm.xlu1 %2072, %v1853_v31  }
 0x225   : > { %v2080_v33 = vpop.permute.xlu2 %2079 }
 0x226   : > { %v2082_v40 = vunpack.i.h.bf16 %v2080_v33  ;;  %v2081_v41 = vunpack.i.l.bf16 %v2080_v33 }
 0x228   : > { %v1308_v44 = vsel %vm488_vm2, %v2081_v41, %v2082_v40 }
 0x22d   : > { %v1386_v34 = vpop.permute.xlu2 %1385 }
 0x235   : > { %v2095_v42 = vpop.permute.xlu2 %2094 }
 0x236   : > { %v2097_v48 = vunpack.i.h.bf16 %v2095_v42  ;;  %v2096_v49 = vunpack.i.l.bf16 %v2095_v42 }
 0x238   : > { %v1545_v51 = vsel %vm755_vm6, %v2096_v49, %v2097_v48 }
 0x23c   : > { %v1257_v29 = vpop.f32.mrf.mxu2 }
 0x23d   : > { %v2075_v35 = vpop.permute.xlu0 %2074  ;;  %v1623_v62 = vpop.permute.xlu2 %1622 }
 0x23e   : > { %v2077_v36 = vunpack.i.h.bf16 %v2075_v35  ;;  %v2076_v37 = vunpack.i.l.bf16 %v2075_v35 }
 0x240   : > { %v1168_v39 = vsel %vm325_vm3, %v2076_v37, %v2077_v36 }
 0x241   : > { %1192 = vmatpush.msra.mxu3 %v1168_v39 }
 0x242   : > { %2014 = vmatmul.msk.f32.vlgmr.msra.gmra.mxu3 %vm1173_vm14, %v2013_v38 }
 0x243   : > { %1275 = vmatpush.msrb.mxu3 %v1143_v27  ;;  %v1167_v43 = vpop.permute.xlu1 %1166 }
 0x244   : > { %1232 = vmatpush.msrb.mxu1 %v1167_v43  ;;  %v1169_v45 = vsel %vm325_vm3, %v2077_v36, %v1167_v43 }
 0x245   : > { %v1307_v46 = vpop.permute.xlu0 %1306  ;;  %1212 = vmatpush.msrb.mxu0 %v1169_v45  ;;  %2016 = vmatmul.msk.f32.vlgmr.msrb.gmra.mxu1 %vm1173_vm14, %v2013_v38  ;;  %v2110_v6 = vpop.permute.xlu2 %2109 }
 0x246   : > { %1331 = vmatpush.msra.mxu1 %v1308_v44  ;;  %v1309_v47 = vsel %vm488_vm2, %v2082_v40, %v1307_v46  ;;  %2015 = vmatmul.msk.f32.vlgmr.msrb.gmra.mxu0 %vm1173_vm14, %v2013_v38  ;;  %v2112_v11 = vunpack.i.h.bf16 %v2110_v6  ;;  %v2111_v12 = vunpack.i.l.bf16 %v2110_v6 }
 0x247   : > { %1295 = vmatpush.msra.mxu0 %v1155_v30  ;;  %1371 = vmatpush.msra.mxu3 %v1307_v46 }
 0x248   : > { %1351 = vmatpush.msra.mxu2 %v1309_v47  ;;  %v1782_v19 = vsel %vm1022_vm9, %v2111_v12, %v2112_v11 }
 0x249   : > { %2022 = vmatmul.msk.f32.vlgmr.msra.gmra.mxu2 %vm1173_vm14, %v2020_v50 }
 0x24a   : > { %1450 = vmatpush.msrb.mxu2 %v1386_v34  ;;  %2018 = vmatmul.msk.f32.vlgmr.msrb.gmra.mxu3 %vm1173_vm14, %v1156_v32 }
 0x24b   : > { %v2085_v52 = vpop.permute.xlu1 %2084 }
 0x24c   : > { %1568 = vmatpush.msra.mxu2 %v1545_v51  ;;  %v2087_v53 = vunpack.i.h.bf16 %v2085_v52  ;;  %v2086_v54 = vunpack.i.l.bf16 %v2085_v52 }
 0x24d   : > { %v2090_v55 = vpop.permute.xlu0 %2089  ;;  %2021 = vmatmul.msk.f32.vlgmr.msra.gmra.mxu1 %vm1173_vm14, %v2020_v50 }
 0x24e   : > { %v2092_v56 = vunpack.i.h.bf16 %v2090_v55  ;;  %v2091_v57 = vunpack.i.l.bf16 %v2090_v55  ;;  %v1387_v58 = vsel %vm577_vm4, %v2086_v54, %v2087_v53  ;;  %v1388_v59 = vsel %vm577_vm4, %v2087_v53, %v1386_v34  ;;  %2019 = vmatmul.msk.f32.vlgmr.msra.gmra.mxu0 %vm1173_vm14, %v1156_v32 }
 0x24f   : > { %1410 = vmatpush.msrb.mxu0 %v1387_v58  ;;  %1430 = vmatpush.msrb.mxu1 %v1388_v59 }
 0x250   : > { %v1466_v60 = vsel %vm666_vm5, %v2091_v57, %v2092_v56 }
 0x251   : > { %1489 = vmatpush.msrb.mxu3 %v1466_v60  ;;  %2027 = vmatmul.msk.f32.vlgmr.msrb.gmra.mxu2 %vm1173_vm14, %v2024_v61 }
 0x252   : > { %2023 = vmatmul.msk.f32.vlgmr.msra.gmra.mxu3 %vm1173_vm14, %v2020_v50 }
 0x253   : > { %v1465_v63 = vpop.permute.xlu1 %1464 }
 0x254   : > { %1529 = vmatpush.msra.mxu1 %v1465_v63  ;;  %v1467_v0 = vsel %vm666_vm5, %v2092_v56, %v1465_v63 }
 0x255   : > { %v1544_v1 = vpop.permute.xlu0 %1543  ;;  %1509 = vmatpush.msra.mxu0 %v1467_v0  ;;  %2026 = vmatmul.msk.f32.vlgmr.msrb.gmra.mxu1 %vm1173_vm14, %v2024_v61 }
 0x256   : > { %v1546_v2 = vsel %vm755_vm6, %v2097_v48, %v1544_v1  ;;  %2025 = vmatmul.msk.f32.vlgmr.msrb.gmra.mxu0 %vm1173_vm14, %v2024_v61 }
 0x257   : > { %1608 = vmatpush.msrb.mxu0 %v1544_v1  ;;  %1588 = vmatpush.msra.mxu3 %v1546_v2 }
 0x259   : > { %2033 = vmatmul.msk.f32.vlgmr.msra.gmra.mxu2 %vm1173_vm14, %v2032_v5 }
 0x25a   : > { %2029 = vmatmul.msk.f32.vlgmr.msrb.gmra.mxu3 %vm1173_vm14, %v2028_v3 }
 0x25b   : > { %1687 = vmatpush.msrb.mxu3 %v1623_v62  ;;  %v2100_v7 = vpop.permute.xlu1 %2099 }
 0x25c   : > { %v2102_v8 = vunpack.i.h.bf16 %v2100_v7  ;;  %v2101_v9 = vunpack.i.l.bf16 %v2100_v7 }
 0x25d   : > { %v2105_v10 = vpop.permute.xlu0 %2104  ;;  %2031 = vmatmul.msk.f32.vlgmr.msra.gmra.mxu1 %vm1173_vm14, %v2028_v3 }
 0x25e   : > { %v2107_v13 = vunpack.i.h.bf16 %v2105_v10  ;;  %v2106_v14 = vunpack.i.l.bf16 %v2105_v10  ;;  %v1624_v15 = vsel %vm844_vm7, %v2101_v9, %v2102_v8  ;;  %v1625_v16 = vsel %vm844_vm7, %v2102_v8, %v1623_v62  ;;  %2030 = vmatmul.msk.f32.vlgmr.msra.gmra.mxu0 %vm1173_vm14, %v2028_v3 }
 0x25f   : > { %1647 = vmatpush.msrb.mxu1 %v1624_v15  ;;  %1667 = vmatpush.msrb.mxu2 %v1625_v16 }
 0x260   : > { %v1703_v17 = vsel %vm933_vm8, %v2106_v14, %v2107_v13  ;;  %v1866_v14 = vpop.permute.xlu2 %1865 }
 0x261   : > { %1726 = vmatpush.msra.mxu0 %v1703_v17  ;;  %2038 = vmatmul.msk.f32.vlgmr.msrb.gmra.mxu2 %vm1173_vm14, %v2036_v18 }
 0x262   : > { %2034 = vmatmul.msk.f32.vlgmr.msra.gmra.mxu3 %vm1173_vm14, %v2032_v5 }
 0x263   : > { %1805 = vmatpush.msra.mxu3 %v1782_v19  ;;  %v1702_v20 = vpop.permute.xlu1 %1701 }
 0x264   : > { %1766 = vmatpush.msra.mxu2 %v1702_v20  ;;  %v1704_v21 = vsel %vm933_vm8, %v2107_v13, %v1702_v20  ;;  %v1874_v13 = vld [vmem:[%s2462_s7] sm:$0x7] }
 0x265   : > { %v1781_v22 = vpop.permute.xlu0 %1780  ;;  %1746 = vmatpush.msra.mxu1 %v1704_v21  ;;  %v1877_v19 = vperm.slane %v1874_v13, 1  ;;  %v1878_v20 = vperm.slane %v1874_v13, 2 }
 0x266   : > { %v1783_v23 = vsel %vm1022_vm9, %v2112_v11, %v1781_v22  ;;  %2035 = vmatmul.msk.f32.vlgmr.msrb.gmra.mxu0 %vm1173_vm14, %v2032_v5  ;;  %2037 = vmatmul.msk.f32.vlgmr.msrb.gmra.mxu1 %vm1173_vm14, %v2036_v18 }
 0x267   : > { %1845 = vmatpush.msrb.mxu1 %v1781_v22  ;;  %1825 = vmatpush.msrb.mxu0 %v1783_v23 }
 0x269   : > { %2043 = vmatmul.msk.f32.vlgmr.msra.gmra.mxu2 %vm1173_vm14, %v2040_v24 }
 0x26a   : > { %2039 = vmatmul.msk.f32.vlgmr.msrb.gmra.mxu3 %vm1173_vm14, %v2036_v18 }
 0x26b   : > { %v1857_v12 = vpop.permute.xlu1 %1856 }
 0x26e   : > { %2041 = vmatmul.msk.f32.vlgmr.msra.gmra.mxu0 %vm1173_vm14, %v2040_v24  ;;  %2042 = vmatmul.msk.f32.vlgmr.msra.gmra.mxu1 %vm1173_vm14, %v2040_v24  ;;  %v1876_v24 = vperm.slane %v1874_v13, 0 }
 0x272   : > { %2045 = vmatmul.msk.f32.vlgmr.msra.gmra.mxu3 %vm1173_vm14, %v2044_v25 }
 0x276   : > { %2046 = vmatmul.msk.f32.vlgmr.msrb.gmra.mxu0 %vm1173_vm14, %v2044_v25  ;;  %2047 = vmatmul.msk.f32.vlgmr.msrb.gmra.mxu1 %vm1173_vm14, %v2044_v25 }
 0x2c2   : > { %v1234_v27 = vpop.f32.mrf.mxu1 }
 0x2c3   : > { %v1214_v26 = vpop.f32.mrf.mxu0 }
 0x2c5   : > { %v1194_v28 = vpop.f32.mrf.mxu3 }
 0x2c6   : > { %v1258_v46 = vadd.f32 %v1257_v29, %v1194_v28 }
 0x2ca   : > { %v1333_v31 = vpop.f32.mrf.mxu1 }
 0x2cb   : > { %v1297_v30 = vpop.f32.mrf.mxu0  ;;  %v1376_v50 = vadd.f32 %v1333_v31, %v1258_v46 }
 0x2cc   : > { %v1353_v33 = vpop.f32.mrf.mxu2  ;;  %v1298_v43 = vadd.f32 %v1297_v30, %v1234_v27 }
 0x2cd   : > { %v1277_v32 = vpop.f32.mrf.mxu3 }
 0x2ce   : > { %v1278_v42 = vadd.f32 %v1277_v32, %v1214_v26 }
 0x2d0   : > { %v1377_v45 = vadd.f32 %v1353_v33, %v1278_v42 }
 0x2d2   : > { %v1432_v35 = vpop.f32.mrf.mxu1 }
 0x2d3   : > { %v1412_v34 = vpop.f32.mrf.mxu0  ;;  %v1456_v53 = vadd.f32 %v1432_v35, %v1377_v45 }
 0x2d4   : > { %v1452_v37 = vpop.f32.mrf.mxu2  ;;  %v1455_v54 = vadd.f32 %v1412_v34, %v1376_v50 }
 0x2d5   : > { %v1373_v36 = vpop.f32.mrf.mxu3 }
 0x2d6   : > { %v1378_v44 = vadd.f32 %v1373_v36, %v1298_v43 }
 0x2d8   : > { %v1457_v51 = vadd.f32 %v1452_v37, %v1378_v44 }
 0x2da   : > { %v1531_v39 = vpop.f32.mrf.mxu1 }
 0x2db   : > { %v1511_v38 = vpop.f32.mrf.mxu0  ;;  %v1536_v56 = vadd.f32 %v1531_v39, %v1457_v51 }
 0x2dc   : > { %v1570_v41 = vpop.f32.mrf.mxu2  ;;  %v1535_v55 = vadd.f32 %v1511_v38, %v1456_v53 }
 0x2dd   : > { %v1491_v40 = vpop.f32.mrf.mxu3 }
 0x2de   : > { %v1534_v57 = vadd.f32 %v1491_v40, %v1455_v54 }
 0x2e0   : > { %v1613_v63 = vadd.f32 %v1570_v41, %v1534_v57 }
 0x2e3   : > { %v1610_v47 = vpop.f32.mrf.mxu0  ;;  %v1649_v48 = vpop.f32.mrf.mxu1 }
 0x2e4   : > { %v1669_v52 = vpop.f32.mrf.mxu2  ;;  %v1615_v59 = vadd.f32 %v1610_v47, %v1536_v56  ;;  %v1692_v4 = vadd.f32 %v1649_v48, %v1613_v63 }
 0x2e5   : > { %v1590_v49 = vpop.f32.mrf.mxu3 }
 0x2e6   : > { %v1614_v58 = vadd.f32 %v1590_v49, %v1535_v55 }
 0x2e8   : > { %v1693_v2 = vadd.f32 %v1669_v52, %v1614_v58 }
 0x2eb   : > { %v1728_v60 = vpop.f32.mrf.mxu0  ;;  %v1748_v61 = vpop.f32.mrf.mxu1 }
 0x2ec   : > { %v1768_v1 = vpop.f32.mrf.mxu2  ;;  %v1772_v5 = vadd.f32 %v1748_v61, %v1693_v2  ;;  %v1771_v6 = vadd.f32 %v1728_v60, %v1692_v4 }
 0x2ed   : > { %v1689_v62 = vpop.f32.mrf.mxu3 }
 0x2ee   : > { %v1694_v0 = vadd.f32 %v1689_v62, %v1615_v59 }
 0x2f0   : > { %v1773_v3 = vadd.f32 %v1768_v1, %v1694_v0 }
 0x2f3   : > { %v1827_v7 = vpop.f32.mrf.mxu0  ;;  %v1847_v8 = vpop.f32.mrf.mxu1 }
 0x2f4   : > { %v1851_v9 = vadd.f32 %v1827_v7, %v1772_v5  ;;  %v1852_v10 = vadd.f32 %v1847_v8, %v1773_v3 }
 0x2f5   : > { %v1807_v11 = vpop.f32.mrf.mxu3 }
 0x2f6   : > { %v1850_v15 = vadd.f32 %v1807_v11, %v1771_v6  ;;  %v1860_v16 = vmul.f32 %v1857_v12, %v1851_v9  ;;  %v1861_v17 = vmul.f32 %v1857_v12, %v1852_v10 }
 0x2f8   : > { %v1859_v18 = vmul.f32 %v1857_v12, %v1850_v15  ;;  %v1869_v21 = vadd.f32 %v1866_v14, %v1860_v16  ;;  %v1870_v22 = vadd.f32 %v1866_v14, %v1861_v17 }
 0x2fa   : > { %v1868_v23 = vadd.f32 %v1866_v14, %v1859_v18  ;;  %v1872_v25 = vmax.f32 %v1869_v21, 0.0  ;;  %v1873_v26 = vmax.f32 %v1870_v22, 0.0 }
 0x2fc   : > { %v1871_v27 = vmax.f32 %v1868_v23, 0.0  ;;  %v1883_v28 = vmul.f32 %v1877_v19, %v1872_v25  ;;  %v1884_v29 = vmul.f32 %v1878_v20, %v1873_v26 }
 0x2fe   : > { %v1882_v30 = vmul.f32 %v1876_v24, %v1871_v27  ;;  %1886 = vst [vmem:[%s305_s18 + $0x8] sm:$0xff] %v1883_v28 }
 0x2ff   : > { %1888 = vst.msk [vmem:[%s305_s18 + $0x10] sm:$0xff] %vm1887_vm15, %v1884_v29 }
 0x300   : > { %1885 = vst [vmem:[%s305_s18] sm:$0xff] %v1882_v30 }
 0x301 PF: > { %s18_s27 = sadd.s32 1, %s2120_s27  }
 0x302   : > { %p15_p4 = scmp.ge.s32.totalorder %s18_s27, 4  }
 0x304   :  { %17 = sbr.rel (!%p15_p4) target bundleno = 1 (0x1), region = 107 }

</bundles_post_ra>
